<compile_context>
chip_gen: v7x
topology: tpu7x:2x2x1
jax: 0.10.0
libtpu: 0.0.40
codegen_flags: <defaults>
</compile_context>

<pallas_src>
import math

import jax
import jax.numpy as jnp
from jax.experimental import pallas as pl
from jax.experimental.pallas import tpu as pltpu


def _bypass_kernel(src_orig_ref, src_ref, scale_ref, out_ref):
    # src_orig_ref, src_ref, out_ref: (TR, width) block views
    # scale_ref:                      (1, width)  per-lane bypass scale (f32)
    xo = src_orig_ref[...].astype(jnp.float32)
    x = src_ref[...].astype(jnp.float32)
    s = scale_ref[...]                               # (1, width) -> broadcasts over TR
    out_ref[...] = (xo + (x - xo) * s).astype(out_ref.dtype)


def _sublane_multiple(dtype) -> int:
    """Sublane packing for the dtype: 8 for 4-byte, 16 for 2-byte, 32 for 1-byte."""
    itemsize = jnp.dtype(dtype).itemsize
    return 8 * max(1, 4 // itemsize)


def _choose_layout(S, B, C):
    """Pick a lane-dense (rows, width) 2D view of the (S, B, C) tensor.

    width is a multiple of 128 when the shape allows it (fold seq rows into
    lanes); otherwise fall back to (S, B*C).
    """
    lane = B * C
    if lane % 128 == 0:
        return S, lane
    k = 128 // math.gcd(lane, 128)          # smallest k with k*lane % 128 == 0
    if k > 1 and S % k == 0 and S // k >= 1:
        return S // k, k * lane
    return S, lane


def _choose_tile_rows(rows, width, itemsize, sublane, target_bytes):
    """Biggest sublane-multiple row tile under target_bytes; force >=2 steps."""
    t = (target_bytes // (width * itemsize)) // sublane * sublane
    t = max(sublane, int(t))
    if t >= rows:
        # A single full-extent block would cover everything.  If we can split
        # cleanly, force >= 2 grid steps so the "parallel" axis has work for
        # both v7x TensorCores (harmless on single-TC v5e/v6e).
        if rows >= 2 * sublane:
            half = -(-rows // 2)                         # ceil(rows / 2)
            t2 = -(-half // sublane) * sublane           # round up to sublane
            t = t2 if t2 < rows else rows
        else:
            t = rows
    return int(t)


def bypass_module(src_orig, src, bypass_scale, *, tile_rows=None,
                  alias_src_to_output=False):
    """src_orig, src: (seq_len, batch, channels); bypass_scale: (channels,).

    Returns src_orig + (src - src_orig) * bypass_scale, same shape/dtype as src.
    """
    assert src.shape == src_orig.shape, (src.shape, src_orig.shape)
    assert src.dtype == src_orig.dtype, (src.dtype, src_orig.dtype)
    S, B, C = src.shape
    assert bypass_scale.shape == (C,), bypass_scale.shape

    itemsize = jnp.dtype(src.dtype).itemsize
    sublane = _sublane_multiple(src.dtype)

    # Lane-dense 2D view (contiguous reshape: metadata only, no HBM traffic).
    rows, width = _choose_layout(S, B, C)
    xo2 = src_orig.reshape(rows, width)
    x2 = src.reshape(rows, width)
    # Flat index within a row is ((s*B)+b)*C + c; width % C == 0, so tiling the
    # per-channel scale width//C times maps every lane to bypass_scale[c].
    scale2 = jnp.tile(bypass_scale.astype(jnp.float32), width // C).reshape(1, width)

    # Tile over the row axis.  ~4 MiB per operand block amortizes the ~0.35us
    # per-step pipeline overhead to <~6% even at v7x HBM bandwidth, while
    # 3 arrays x 2 buffers x 4 MiB = 24 MiB stays inside v7x's 64 MiB VMEM.
    if tile_rows is None:
        tile_rows = _choose_tile_rows(rows, width, itemsize, sublane,
                                      target_bytes=4 << 20)
    else:
        tile_rows = int(tile_rows)
        if tile_rows < rows:
            tile_rows = max(sublane, (tile_rows // sublane) * sublane)
        tile_rows = min(tile_rows, rows)

    grid = (pl.cdiv(rows, tile_rows),)

    # Explicit VMEM budget: 3 arrays x 2 pipeline buffers x tile + scale row,
    # plus headroom; clamp to [16 MiB, 48 MiB] (safe on v5e/v6e/v7x).
    tile_bytes = tile_rows * width * itemsize
    vmem_needed = 3 * 2 * tile_bytes + 2 * width * 4 + (2 << 20)
    vmem_limit = int(min(max(vmem_needed, 16 << 20), 48 << 20))

    # Scheduler hint: short, bandwidth-bound custom call (2 reads + 1 write,
    # 3 flops/elem, no transcendentals).
    n_elem = S * B * C
    cost = pl.CostEstimate(flops=3 * n_elem, transcendentals=0,
                           bytes_accessed=3 * n_elem * itemsize + C * 4)

    kwargs = {}
    if alias_src_to_output:
        kwargs["input_output_aliases"] = {1: 0}      # src buffer -> output

    out2 = pl.pallas_call(
        _bypass_kernel,
        out_shape=jax.ShapeDtypeStruct((rows, width), src.dtype),
        grid=grid,
        in_specs=[
            pl.BlockSpec((tile_rows, width), lambda i: (i, 0)),   # src_orig
            pl.BlockSpec((tile_rows, width), lambda i: (i, 0)),   # src
            pl.BlockSpec((1, width), lambda i: (0, 0)),           # bypass scale
        ],
        out_specs=pl.BlockSpec((tile_rows, width), lambda i: (i, 0)),
        compiler_params=pltpu.CompilerParams(
            dimension_semantics=("parallel",),
            vmem_limit_bytes=vmem_limit),
        cost_estimate=cost,
        **kwargs,
    )(xo2, x2, scale2)

    return out2.reshape(S, B, C)


def _reference(src_orig, src, bypass_scale):
    """Pure-JAX mirror of BypassModule.forward in eval mode (f32 math + cast)."""
    xo = src_orig.astype(jnp.float32)
    x = src.astype(jnp.float32)
    s = bypass_scale.astype(jnp.float32)[None, None, :]
    return (xo + (x - xo) * s).astype(src.dtype)


if __name__ == "__main__":
    key = jax.random.PRNGKey(0)

    # --- Case 1: f32, B*C already a multiple of 128, S not a tile multiple ---
    S, B, C = 50, 2, 64
    k1, k2 = jax.random.split(key)
    src_orig = jax.random.normal(k1, (S, B, C), dtype=jnp.float32)
    src = jax.random.normal(k2, (S, B, C), dtype=jnp.float32)
    bypass_scale = jnp.full((C,), 0.5, dtype=jnp.float32)     # module's init value

    out = jax.block_until_ready(bypass_module(src_orig, src, bypass_scale))
    ref = _reference(src_orig, src, bypass_scale)
    assert out.shape == src.shape and out.dtype == src.dtype
    assert jnp.allclose(out, ref, atol=1e-6, rtol=1e-6), "f32 mismatch vs reference"

    # --- Case 2: bf16, B*C = 192 (not a multiple of 128) -> lane folding ---
    S2, B2, C2 = 64, 1, 192
    k3, k4 = jax.random.split(k2)
    src_orig2 = jax.random.normal(k3, (S2, B2, C2), dtype=jnp.bfloat16)
    src2 = jax.random.normal(k4, (S2, B2, C2), dtype=jnp.bfloat16)
    scale2 = jnp.full((C2,), 0.5, dtype=jnp.float32)

    out2 = jax.block_until_ready(bypass_module(src_orig2, src2, scale2))
    ref2 = _reference(src_orig2, src2, scale2)
    assert out2.shape == src2.shape and out2.dtype == src2.dtype
    assert jnp.allclose(out2.astype(jnp.float32), ref2.astype(jnp.float32),
                        atol=1e-2, rtol=1e-2), "bf16 mismatch vs reference"

    print("KERNEL_OK")
</pallas_src>

<mosaic_0001>
module attributes {stable_mosaic.version = 11 : i64} {
  func.func @_bypass_kernel(%arg0: i32, %arg1: memref<32x128xf32, #tpu.memory_space<vmem>>, %arg2: memref<32x128xf32, #tpu.memory_space<vmem>>, %arg3: memref<1x128xf32, #tpu.memory_space<vmem>>, %arg4: memref<32x128xf32, #tpu.memory_space<vmem>>) attributes {dimension_semantics = [#tpu.dimension_semantics<parallel>], iteration_bounds = array<i64: 2>, scalar_prefetch = 0 : i64, scratch_operands = 0 : i64, tpu.core_type = #tpu.core_type<tc>, window_params = [{transform_indices = @transform_0, window_bounds = array<i64: 32, 128>}, {transform_indices = @transform_1, window_bounds = array<i64: 32, 128>}, {pipeline_mode = #tpu.pipeline_mode<synchronous>, transform_indices = @transform_2, window_bounds = array<i64: 1, 128>}, {transform_indices = @transform_3, window_bounds = array<i64: 32, 128>}]} {
    %c0 = arith.constant 0 : index
    %c0_0 = arith.constant 0 : index
    %0 = vector.load %arg1[%c0, %c0_0] : memref<32x128xf32, #tpu.memory_space<vmem>>, vector<32x128xf32>
    %c0_1 = arith.constant 0 : index
    %c0_2 = arith.constant 0 : index
    %1 = vector.load %arg2[%c0_1, %c0_2] : memref<32x128xf32, #tpu.memory_space<vmem>>, vector<32x128xf32>
    %c0_3 = arith.constant 0 : index
    %c0_4 = arith.constant 0 : index
    %2 = vector.load %arg3[%c0_3, %c0_4] : memref<1x128xf32, #tpu.memory_space<vmem>>, vector<1x128xf32>
    %3 = arith.subf %1, %0 : vector<32x128xf32>
    %4 = vector.broadcast %2 : vector<1x128xf32> to vector<32x128xf32>
    %5 = arith.mulf %3, %4 : vector<32x128xf32>
    %6 = arith.addf %0, %5 : vector<32x128xf32>
    %c0_5 = arith.constant 0 : index
    %c0_6 = arith.constant 0 : index
    %7 = vector.load %arg4[%c0_5, %c0_6] : memref<32x128xf32, #tpu.memory_space<vmem>>, vector<32x128xf32>
    tpu.vector_store %arg4[%c0_5, %c0_6], %6 {strides = array<i32>} : memref<32x128xf32, #tpu.memory_space<vmem>>, vector<32x128xf32>,
    return
  }
  func.func @transform_0(%arg0: i32) -> (i32, i32) {
    %c0_i32 = arith.constant 0 : i32
    %c0_i32_0 = arith.constant 0 : i32
    return %arg0, %c0_i32 : i32, i32
  }
  func.func @transform_1(%arg0: i32) -> (i32, i32) {
    %c0_i32 = arith.constant 0 : i32
    %c0_i32_0 = arith.constant 0 : i32
    return %arg0, %c0_i32 : i32, i32
  }
  func.func @transform_2(%arg0: i32) -> (i32, i32) {
    %c0_i32 = arith.constant 0 : i32
    %c0_i32_0 = arith.constant 0 : i32
    %c0_i32_1 = arith.constant 0 : i32
    return %c0_i32, %c0_i32_0 : i32, i32
  }
  func.func @transform_3(%arg0: i32) -> (i32, i32) {
    %c0_i32 = arith.constant 0 : i32
    %c0_i32_0 = arith.constant 0 : i32
    return %arg0, %c0_i32 : i32, i32
  }
}

</mosaic_0001>

<bundles_post_ra>
// kernel: tpu_custom_call.1
= control target key start
LH: loop header
LB: loop body
LE: loop exit
PB: predicated region body
PF: predicated region fallthrough
CT: control target
= control target key end

     0   :  { %8 = vsyncpa [#allocation3], 0  ;;  %s868_s0 = inlined_call_operand.hbm [shape: f32[50,128], index: 0, kind: input, shape index: {}]   ;;  %s869_s1 = inlined_call_operand.hbm [shape: f32[50,128], index: 1, kind: input, shape index: {}]   ;;  %s870_s2 = inlined_call_operand.vmem [shape: f32[1,128], index: 2, kind: input, shape index: {}]   ;;  %s871_s3 = inlined_call_operand.hbm [shape: f32[50,128], index: 3, kind: output, shape index: {}]  }
   0x1   :  { %10 = vsyncpa [#allocation3 + $0x1], 0 }
   0x2   :  { %11 = vsyncpa [#allocation6], 0 }
   0x3   :  { %13 = vsyncpa [#allocation6 + $0x1], 0 }
   0x4   :  { %14 = vsyncpa [#allocation4], 0 }
   0x5   :  { %16 = vsyncpa [#allocation4 + $0x1], 0  ;;  %s640_s12 = smov 0   ;;  %s642_s13 = smov 0  }
   0x6   :  { %s644_s14 = smov 0   ;;  %s646_s15 = smov 0  }
   0x7 LB: > { %s661_s16 = sadd.s32 4294967295, %s609_s15   ;;  %s403_s17 = sadd.s32 4294967294, %s609_s15   ;;  %s609_s15 = sphi %s646_s15, %s883_s15   ;;  %s605_s14 = sphi %s644_s14, %s882_s14   ;;  %s601_s13 = sphi %s642_s13, %s881_s13   ;;  %s597_s12 = sphi %s640_s12, %s880_s12  }
   0x8   : > { %s665_s18 = sadd.s32 1, %s609_s15   ;;  %s29_s19 = sadd.s32 1, %s605_s14 }
   0x9   : > { %s26_s20 = ssub.s32 %s609_s15, %s665_s18  ;;  %p36_p0 = scmp.ne.s32.totalorder %s605_s14, %s601_s13 }
   0xa   : > { %p27_p1 = scmp.eq.s32.totalorder %s26_s20, 0  ;;  %p37_p2 = scmp.eq.s32.totalorder %s609_s15, 0 }
   0xb   : > { %p42_p3 = scmp.ne.s32.totalorder %s601_s13, %s597_s12  ;;  %p43_p4 = scmp.eq.s32.totalorder %s661_s16, 0 }
   0xc   : > { %s677_s21 = scalar_select %p27_p1, %s605_s14, %s29_s19  }
   0xd   : > { %p679_p5 = por %p37_p2, %p36_p0  ;;  %p683_p6 = por %p43_p4, %p42_p3 }
   0xe   : > { %p113_p7 = scmp.eq.s32.totalorder %s661_s16, 1  ;;  %p119_p8 = scmp.eq.s32.totalorder %s403_s17, 1 }
   0xf   : > { %p872_p11 = scmp.ge.s32.totalorder %s609_s15, 2 }
  0x10   : > { %p688_p9 = por %p113_p7, %p36_p0  ;;  %p692_p10 = por %p119_p8, %p42_p3 }
  0x11   : > { %138 = sbr.rel (%p872_p11) target bundleno = 94 (0x5e), region = 20 }
  0x12   : > { %s875_s24 = scalar_select %p688_p9, 1, 0 }
  0x13   : > { %s876_s25 = scalar_select %p692_p10, 1, 0 }
  0x18   : > { %141 = sbr.rel (!%p679_p5) target bundleno = 59 (0x3b), region = 24  ;;  %s142_s26 = sand.u32 (%p679_p5), 1, %s605_s14  }
  0x19   : > { %s407_s27 = sshll.u32 (%p679_p5), %s609_s15, 2  ;;  %s406_s28 = sshll.u32 (%p679_p5), %s142_s26, 5 }
  0x1a   : > { %s148_s29 = ssub.s32 (%p679_p5), 7, %s407_s27  ;;  %s706_s5 = scalar_lea.sflag (%p679_p5), [#allocation3], %s142_s26 }
  0x1b   : > { %p149_p12 = scmp.lt.s32.totalorder (%p679_p5), %s148_s29, 4  ;;  %s146_s6 = scalar_lea.vmem (%p679_p5), [#allocation2], %s406_s28 }
  0x1f   : > { %s885_s29 = smov (!%p149_p12, %s148_s29), 4 }
  0x20   : > { %s703_s30 = sshll.u32 %s885_s29, 7 }
  0x21   : > { %s153_s4 = ssub.s32 512, %s703_s30 }
  0x22   : > { %154 = vsyncadd %s706_s5, %s153_s4  ;;  %p409_p13 = scmp.ne.s32.totalorder %s703_s30, 0  ;;  %s434_s7 = sshll.u32 %s609_s15, 9 }
  0x23   : > { %s714_s10 = scalar_lea.hbm %s868_s0, %s434_s7  ;;  %s159_s11 = sshll.u32 %s146_s6, 4  ;;  %s716_s11 = int_to_ptr.vmem [resolvable:$true] %s159_s11 }
  0x24   : > { %s483_s17 = scalar_lea.hbm %s714_s10, %s703_s30  ;;  %s487_s26 = scalar_lea.hbm %s868_s0, 896 }
  0x25   : > { %p484_p0 = scmp.ne.s32.totalorder %s714_s10, %s483_s17  ;;  %p488_p3 = scmp.lt.u32.totalorder %s714_s10, %s868_s0 }
  0x26   : > { %p489_p4 = scmp.lt.u32.totalorder %s487_s26, %s483_s17  ;;  %p491_p8 = scmp.lt.u32.totalorder %s483_s17, %s714_s10 }
  0x27   : > { %p485_p1 = pnand %p484_p0, %p409_p13 }
  0x28   : > { %p490_p7 = por %p489_p4, %p488_p3 }
  0x29   : > { %p486_p2 = pneg %p485_p1 }
  0x2a   : > { %p492_p12 = por %p491_p8, %p490_p7 }
  0x2c   : > { %p493_p11 = pnand %p492_p12, %p486_p2 }
  0x2e   : > { %496 = shalt.err (!%p493_p11)
}
  0x2f   : > { %s497_s29 = scalar_lea.vmem %s716_s11, %s703_s30  ;;  %s611_s4 = smov [#allocation2]  }
  0x30   : > { %p498_p0 = scmp.ne.s32.totalorder %s716_s11, %s497_s29  ;;  %s501_s6 = sshll.u32 %s611_s4, 4  ;;  %s502_s6 = int_to_ptr.vmem [resolvable:$false] %s501_s6 }
  0x31   : > { %s503_s7 = scalar_lea.vmem %s502_s6, 1024  ;;  %p504_p9 = scmp.lt.s32.totalorder %s716_s11, %s502_s6 }
  0x32   : > { %p499_p1 = pnand %p498_p0, %p409_p13  ;;  %p505_p3 = scmp.lt.s32.totalorder %s503_s7, %s497_s29 }
  0x34   : > { %p500_p10 = pneg %p499_p1  ;;  %p506_p4 = por %p505_p3, %p504_p9 }
  0x36   : > { %p507_p7 = pnand %p506_p4, %p500_p10 }
  0x38   : > { %510 = shalt.err (!%p507_p7)
}
  0x39   : > { %s612_s8 = smov 128   ;;  %s613_s9 = smov 8  }
  0x3a   : > { %165 = dma.hbm_to_vmem [thread:$0]  (%p409_p13), %s714_s10, %s703_s30, %s716_s11, %s706_s5, %s612_s8, %s612_s8, %s613_s9  }
  0x3b PF: > { %168 = sbr.rel (!%p679_p5) target bundleno = 94 (0x5e), region = 28  ;;  %s169_s17 = sand.u32 (%p679_p5), 1, %s605_s14  }
  0x3c   : > { %s414_s19 = sshll.u32 (%p679_p5), %s609_s15, 2  ;;  %s413_s20 = sshll.u32 (%p679_p5), %s169_s17, 5 }
  0x3d   : > { %s175_s26 = ssub.s32 (%p679_p5), 7, %s414_s19  ;;  %s750_s29 = scalar_lea.sflag (%p679_p5), [#allocation6], %s169_s17 }
  0x3e   : > { %p176_p9 = scmp.lt.s32.totalorder (%p679_p5), %s175_s26, 4  ;;  %s173_s30 = scalar_lea.vmem (%p679_p5), [#allocation5], %s413_s20 }
  0x42   : > { %s887_s26 = smov (!%p176_p9, %s175_s26), 4 }
  0x43   : > { %s747_s27 = sshll.u32 %s887_s26, 7 }
  0x44   : > { %s180_s28 = ssub.s32 512, %s747_s27 }
  0x45   : > { %181 = vsyncadd %s750_s29, %s180_s28  ;;  %p416_p5 = scmp.ne.s32.totalorder %s747_s27, 0  ;;  %s435_s22 = sshll.u32 %s609_s15, 9 }
  0x46   : > { %s758_s11 = scalar_lea.hbm %s869_s1, %s435_s22  ;;  %s186_s4 = sshll.u32 %s173_s30, 4  ;;  %s760_s4 = int_to_ptr.vmem [resolvable:$true] %s186_s4 }
  0x47   : > { %s511_s6 = scalar_lea.hbm %s758_s11, %s747_s27  ;;  %s515_s9 = scalar_lea.hbm %s869_s1, 896 }
  0x48   : > { %p512_p10 = scmp.ne.s32.totalorder %s758_s11, %s511_s6  ;;  %p516_p2 = scmp.lt.u32.totalorder %s758_s11, %s869_s1 }
  0x49   : > { %p517_p8 = scmp.lt.u32.totalorder %s515_s9, %s511_s6  ;;  %p519_p0 = scmp.lt.u32.totalorder %s511_s6, %s758_s11 }
  0x4a   : > { %p513_p11 = pnand %p512_p10, %p416_p5 }
  0x4b   : > { %p518_p12 = por %p517_p8, %p516_p2 }
  0x4c   : > { %p514_p13 = pneg %p513_p11 }
  0x4d   : > { %p520_p1 = por %p519_p0, %p518_p12 }
  0x4f   : > { %p521_p3 = pnand %p520_p1, %p514_p13 }
  0x51   : > { %524 = shalt.err (!%p521_p3)
}
  0x52   : > { %s525_s20 = scalar_lea.vmem %s760_s4, %s747_s27  ;;  %s614_s26 = smov [#allocation5]  }
  0x53   : > { %p526_p4 = scmp.ne.s32.totalorder %s760_s4, %s525_s20  ;;  %s529_s28 = sshll.u32 %s614_s26, 4  ;;  %s530_s28 = int_to_ptr.vmem [resolvable:$false] %s529_s28 }
  0x54   : > { %s531_s30 = scalar_lea.vmem %s530_s28, 1024  ;;  %p532_p10 = scmp.lt.s32.totalorder %s760_s4, %s530_s28 }
  0x55   : > { %p527_p7 = pnand %p526_p4, %p416_p5  ;;  %p533_p11 = scmp.lt.s32.totalorder %s531_s30, %s525_s20 }
  0x57   : > { %p528_p9 = pneg %p527_p7  ;;  %p534_p2 = por %p533_p11, %p532_p10 }
  0x59   : > { %p535_p8 = pnand %p534_p2, %p528_p9 }
  0x5b   : > { %538 = shalt.err (!%p535_p8)
}
  0x5c   : > { %s615_s22 = smov 128   ;;  %s616_s5 = smov 8  }
  0x5d   : > { %192 = dma.hbm_to_vmem [thread:$0]  (%p416_p5), %s758_s11, %s747_s27, %s760_s4, %s750_s29, %s615_s22, %s615_s22, %s616_s5  }
  0x5e PF: > { %p420_p13 = scmp.ge.s32.totalorder %s609_s15, 1  ;;  %p194_p12 = scmp.lt.s32.totalorder %s609_s15, 3 }
  0x60   : > { %p195_p0 = pnand %p420_p13, %p194_p12 }
  0x61   : > { %s790_s10 = sand.u32 (!%p195_p0), 1, %s601_s13  }
  0x62   : > { %198 = sbr.rel (%p195_p0) target bundleno = 147 (0x93), region = 32  ;;  %s421_s6 = sshll.u32 (!%p195_p0), %s790_s10, 5 }
  0x63   : > { %s201_s7 = scalar_lea.sflag (!%p195_p0), [#allocation3], %s790_s10  ;;  %s204_s8 = scalar_lea.vmem (!%p195_p0), [#allocation2], %s421_s6 }
  0x69   : > { %584 = dma.done.wait (%p683_p6), %s201_s7, 512  }
  0x6a   : > { %586 = vsyncadd (%p683_p6), %s201_s7, 4294966784  ;;  %s210_s27 = scalar_lea.sflag [#allocation6], %s790_s10  ;;  %s213_s29 = scalar_lea.vmem [#allocation5], %s421_s6 }
  0x6b   : > { %588 = dma.done.wait (%p683_p6), %s210_s27, 512  }
  0x6c   : > { %590 = vsyncadd (%p683_p6), %s210_s27, 4294966784  ;;  %v256_v0 = vld [vmem:[%s204_s8] sm:$0xff]  ;;  %v257_v4 = vld [vmem:[%s204_s8 + $0x8] sm:$0xff]  ;;  %s240_s23 = scalar_lea.vmem [#allocation7], %s421_s6  ;;  %s288_s9 = scalar_lea.sflag [#allocation4], %s790_s10 }
  0x6d   : > { %v260_v1 = vld [vmem:[%s213_s29] sm:$0xff]  ;;  %v261_v5 = vld [vmem:[%s213_s29 + $0x8] sm:$0xff]  ;;  %v258_v6 = vld [vmem:[%s204_s8 + $0x10] sm:$0xff]  ;;  %p877_p6 = scmp.ne.s32.totalorder %s875_s24, 0 }
  0x6e   : > { %v424_v2 = vld [vmem:[%s870_s2] ss:$0 sm:$0xff]  ;;  %v265_v3 = vsub.f32 %v260_v1, %v256_v0  ;;  %v266_v7 = vsub.f32 %v261_v5, %v257_v4  ;;  %v262_v8 = vld [vmem:[%s213_s29 + $0x10] sm:$0xff]  ;;  %v259_v9 = vld [vmem:[%s204_s8 + $0x18] sm:$0xff]  ;;  %s426_s17 = sshll.u32 (%p877_p6), %s661_s16, 2 }
  0x6f   : > { %v263_v10 = vld [vmem:[%s213_s29 + $0x18] sm:$0xff]  ;;  %v267_v12 = vsub.f32 %v262_v8, %v258_v6  ;;  %s296_s19 = ssub.s32 (%p877_p6), 7, %s426_s17 }
  0x70   : > { %v275_v11 = vmul.f32 %v424_v2, %v265_v3  ;;  %v268_v13 = vsub.f32 %v263_v10, %v259_v9  ;;  %v276_v14 = vmul.f32 %v424_v2, %v266_v7  ;;  %294 = sbr.rel (!%p877_p6) target bundleno = 147 (0x93), region = 44  ;;  %p297_p5 = scmp.lt.s32.totalorder (%p877_p6), %s296_s19, 4 }
  0x71   : > { %v277_v16 = vmul.f32 %v424_v2, %v267_v12 }
  0x72   : > { %v279_v15 = vadd.f32 %v275_v11, %v256_v0  ;;  %v278_v17 = vmul.f32 %v424_v2, %v268_v13  ;;  %v280_v18 = vadd.f32 %v276_v14, %v257_v4 }
  0x73   : > { %v281_v19 = vadd.f32 %v277_v16, %v258_v6 }
  0x74   : > { %283 = vst [vmem:[%s240_s23] sm:$0xff] %v279_v15  ;;  %v282_v20 = vadd.f32 %v278_v17, %v259_v9  ;;  %284 = vst [vmem:[%s240_s23 + $0x8] sm:$0xff] %v280_v18 }
  0x75   : > { %285 = vst [vmem:[%s240_s23 + $0x10] sm:$0xff] %v281_v19 }
  0x76   : > { %286 = vst [vmem:[%s240_s23 + $0x18] sm:$0xff] %v282_v20 }
  0x77   : > { %s889_s19 = smov (!%p297_p5, %s296_s19), 4 }
  0x78   : > { %s810_s20 = sshll.u32 %s889_s19, 7 }
  0x79   : > { %s301_s26 = ssub.s32 512, %s810_s20 }
  0x7a   : > { %302 = vsyncadd %s288_s9, %s301_s26  ;;  %p428_p1 = scmp.ne.s32.totalorder %s810_s20, 0  ;;  %s436_s28 = sshll.u32 %s661_s16, 9 }
  0x7b   : > { %s820_s22 = scalar_lea.hbm %s871_s3, %s436_s28  ;;  %s307_s5 = sshll.u32 %s240_s23, 4  ;;  %s822_s5 = int_to_ptr.vmem [resolvable:$true] %s307_s5 }
  0x7c   : > { %s539_s6 = scalar_lea.vmem %s822_s5, %s810_s20  ;;  %s617_s7 = smov [#allocation7]  }
  0x7d   : > { %p540_p3 = scmp.ne.s32.totalorder %s822_s5, %s539_s6  ;;  %s543_s8 = sshll.u32 %s617_s7, 4  ;;  %s544_s8 = int_to_ptr.vmem [resolvable:$false] %s543_s8 }
  0x7e   : > { %s545_s16 = scalar_lea.vmem %s544_s8, 1024  ;;  %p546_p9 = scmp.lt.s32.totalorder %s822_s5, %s544_s8 }
  0x7f   : > { %p541_p4 = pnand %p540_p3, %p428_p1  ;;  %p547_p10 = scmp.lt.s32.totalorder %s545_s16, %s539_s6 }
  0x81   : > { %p542_p7 = pneg %p541_p4  ;;  %p548_p11 = por %p547_p10, %p546_p9 }
  0x83   : > { %p549_p2 = pnand %p548_p11, %p542_p7 }
  0x85   : > { %552 = shalt.err (!%p549_p2)
}
  0x86   : > { %s553_s27 = scalar_lea.hbm %s820_s22, %s810_s20  ;;  %s557_s4 = scalar_lea.hbm %s871_s3, 896 }
  0x87   : > { %p554_p8 = scmp.ne.s32.totalorder %s820_s22, %s553_s27  ;;  %p558_p0 = scmp.lt.u32.totalorder %s820_s22, %s871_s3 }
  0x88   : > { %p559_p6 = scmp.lt.u32.totalorder %s557_s4, %s553_s27  ;;  %p561_p3 = scmp.lt.u32.totalorder %s553_s27, %s820_s22 }
  0x89   : > { %p555_p13 = pnand %p554_p8, %p428_p1 }
  0x8a   : > { %p560_p5 = por %p559_p6, %p558_p0 }
  0x8b   : > { %p556_p12 = pneg %p555_p13 }
  0x8c   : > { %p562_p4 = por %p561_p3, %p560_p5 }
  0x8e   : > { %p563_p7 = pnand %p562_p4, %p556_p12 }
  0x90   : > { %566 = shalt.err (!%p563_p7)
}
  0x91   : > { %s618_s19 = smov 128   ;;  %s619_s26 = smov 8  }
  0x92   : > { %313 = dma.vmem_to_hbm [thread:$0]  (%p428_p1), %s822_s5, %s810_s20, %s820_s22, %s288_s9, %s618_s19, %s618_s19, %s619_s26  }
  0x93 PF: > { %s322_s28 = sand.u32 1, %s597_s12   ;;  %p878_p9 = scmp.ne.s32.totalorder %s876_s25, 0 }
  0x94   : > { %p879_p10 = scmp.ge.s32.totalorder %s609_s15, 2  ;;  %s323_s24 = scalar_lea.sflag [#allocation4], %s322_s28 }
  0x96   : > { %p441_p11 = pnand %p879_p10, %p878_p9 }
  0x98   : > { %592 = dma.done.wait (!%p441_p11), %s323_s24, 512  }
  0x99   : > { %594 = vsyncadd (!%p441_p11), %s323_s24, 4294966784  ;;  %p19_p2 = scmp.ge.s32.totalorder %s665_s18, 4   ;;  %s880_s12 = smov %s601_s13 }
  0x9a   : > { %s881_s13 = smov %s605_s14  ;;  %s882_s14 = smov %s677_s21 }
  0x9b   : > { %s883_s15 = smov %s665_s18  ;;  %21 = sbr.rel (!%p19_p2) target bundleno = 7 (0x7), region = 90 }
  0xa2   :  { %328 = vsyncpa [#allocation3], 1 }
  0xa3   :  { %330 = vsyncpa [#allocation3 + $0x1], 1 }
  0xa4   :  { %331 = vsyncpa [#allocation6], 1 }
  0xa5   :  { %333 = vsyncpa [#allocation6 + $0x1], 1 }
  0xa6   :  { %334 = vsyncpa [#allocation4], 1 }
  0xa7   :  { %336 = vsyncpa [#allocation4 + $0x1], 1 }

</bundles_post_ra>
